<compile_context>
chip_gen: v7x
topology: tpu7x:2x2x1
jax: 0.10.0
libtpu: 0.0.40
codegen_flags: <defaults>
</compile_context>

<pallas_src>
import functools

import jax
import jax.numpy as jnp
from jax.experimental import pallas as pl
from jax.experimental.pallas import tpu as pltpu


def _round_up(x: int, m: int) -> int:
    return ((x + m - 1) // m) * m


def _mxu_pad_multiple() -> int:
    """256 on v6e/v7x (256x256 MXU), 128 otherwise. 128 is always legal."""
    try:
        kind = jax.devices()[0].device_kind.lower()
    except Exception:
        return 128
    return 256 if ("v6" in kind or "v7" in kind) else 128


def _vmem_capacity_bytes() -> int:
    """Per-core VMEM capacity; conservative 64 MiB (v7x) fallback."""
    try:
        return int(pltpu.get_tpu_info().vmem_capacity_bytes)
    except Exception:
        return 64 << 20


# --------------------------------------------------------------------------
# Weight preparation (one-time, NOT on the per-call path)
# --------------------------------------------------------------------------
def prepare_weights(weights, pad_multiple=None):
    """PyTorch layout (out_features, in_features) -> (in_pad, out_pad) bf16,
    zero-padded so both dims are lane-dense multiples of the MXU tile."""
    if pad_multiple is None:
        pad_multiple = _mxu_pad_multiple()
    prepped = []
    for w in weights:
        w = jnp.asarray(w, jnp.float32)
        out_d, in_d = w.shape
        in_p = _round_up(in_d, pad_multiple)
        out_p = _round_up(out_d, pad_multiple)
        wt = jnp.zeros((in_p, out_p), jnp.float32).at[:in_d, :out_d].set(w.T)
        prepped.append(wt.astype(jnp.bfloat16))
    return prepped


# --------------------------------------------------------------------------
# Kernel
# --------------------------------------------------------------------------
def _make_group_kernel(n_weights: int, relu_output: bool):
    """Linear -> (ReLU -> Linear)* [-> ReLU]; bf16 MXU operands, f32 accum."""

    def kernel(*refs):
        x_ref = refs[0]                      # (TILE_B, in_pad)   bf16
        w_refs = refs[1:1 + n_weights]       # (in_pad_i, out_pad_i) bf16, resident
        o_ref = refs[-1]                     # (TILE_B, out_pad)  bf16 (or out_dtype)

        h = jnp.dot(x_ref[...], w_refs[0][...],
                    preferred_element_type=jnp.float32)
        for w_ref in w_refs[1:]:
            # ReLU in f32 (VPU), then carry the activation in bf16 so the f32
            # copy dies immediately (halves live intermediate between layers).
            h = jnp.maximum(h, 0.0).astype(jnp.bfloat16)
            h = jnp.dot(h, w_ref[...], preferred_element_type=jnp.float32)
        if relu_output:
            # Group boundary inside the ReLU->Linear chain: store post-ReLU.
            h = jnp.maximum(h, 0.0)
        o_ref[...] = h.astype(o_ref.dtype)

    return kernel


# --------------------------------------------------------------------------
# Planning (trace-time Python, static shapes only)
# --------------------------------------------------------------------------
def _group_vmem_bytes(tile_b, group_w, out_itemsize):
    in_pad = group_w[0].shape[0]
    out_pad = group_w[-1].shape[1]
    widest = max(w.shape[1] for w in group_w)
    w_bytes = sum(w.size * 2 for w in group_w)        # single-buffered weights
    x_tile = 2 * tile_b * in_pad * 2                  # bf16, double-buffered
    o_tile = 2 * tile_b * out_pad * out_itemsize      # double-buffered output
    interm = 3 * tile_b * widest * 4                  # f32 h + bf16 copy headroom
    return int(w_bytes + x_tile + o_tile + interm)


def _plan(weights_t, batch):
    cap = _vmem_capacity_bytes()
    usable = cap - max(8 << 20, cap // 8)             # leave scratch headroom
    min_tile = 16                                     # bf16 sublane packing

    # Greedily split the layer stack into groups whose single-buffered weights
    # (+ minimal tiles) fit the per-core VMEM budget.
    groups, cur = [], []
    for w in weights_t:
        cand = cur + [w]
        if cur and _group_vmem_bytes(min_tile, cand, 4) > usable:
            groups.append(cur)
            cur = [w]
        else:
            cur = cand
    groups.append(cur)

    def fits(tb):
        return all(_group_vmem_bytes(tb, g, 4) <= usable for g in groups)

    # Largest batch tile that fits VMEM (amortizes grid-step overhead, long MXU
    # M runs), capped at 1024.
    tile_b = _round_up(min(max(batch, 1), 1024), min_tile)
    while tile_b > min_tile and not fits(tile_b):
        tile_b = _round_up(tile_b // 2, min_tile)
    batch_pad = _round_up(batch, tile_b)

    # Guarantee >= 2 grid steps when the batch allows it, so the "parallel"
    # batch axis can shard across v7x's 2 TensorCores.
    while batch_pad // tile_b < 2 and tile_b > min_tile:
        tile_b = _round_up(tile_b // 2, min_tile)
        batch_pad = _round_up(batch, tile_b)

    needed = max(_group_vmem_bytes(tile_b, g, 4) for g in groups)
    vmem_limit = int(min(usable, needed + (16 << 20)))
    return groups, tile_b, batch_pad, vmem_limit


# --------------------------------------------------------------------------
# One pallas_call per layer group
# --------------------------------------------------------------------------
def _run_group(x_p, group_w, tile_b, out_dtype, relu_output, vmem_limit):
    batch_pad, in_pad = x_p.shape
    out_pad = group_w[-1].shape[1]
    n_w = len(group_w)
    grid = (batch_pad // tile_b,)

    # Activation tile keeps the default double buffering (its DMA recurs);
    # weights never change across the batch grid -> single buffer.
    x_spec = pl.BlockSpec((tile_b, in_pad), lambda i: (i, 0))
    w_specs = [pl.BlockSpec(tuple(w.shape), lambda i: (0, 0),
                            pipeline_mode=pl.Buffered(1))
               for w in group_w]
    o_spec = pl.BlockSpec((tile_b, out_pad), lambda i: (i, 0))

    out_itemsize = jnp.dtype(out_dtype).itemsize
    flops = int(2 * batch_pad * sum(w.shape[0] * w.shape[1] for w in group_w))
    weight_bytes = int(sum(w.size * 2 for w in group_w))
    bytes_accessed = int(x_p.size * 2 + weight_bytes
                         + batch_pad * out_pad * out_itemsize)

    return pl.pallas_call(
        _make_group_kernel(n_w, relu_output),
        out_shape=jax.ShapeDtypeStruct((batch_pad, out_pad), out_dtype),
        grid=grid,
        in_specs=[x_spec] + w_specs,
        out_specs=o_spec,
        compiler_params=pltpu.CompilerParams(
            dimension_semantics=("parallel",),
            vmem_limit_bytes=vmem_limit),
        cost_estimate=pl.CostEstimate(
            flops=flops, transcendentals=0, bytes_accessed=bytes_accessed),
    )(x_p, *group_w)


@functools.partial(jax.jit, static_argnames=("out_dim", "out_dtype"))
def dnn_forward(x, weights_t, out_dim, out_dtype=jnp.bfloat16):
    """x: (batch, input_dim) f32; weights_t: output of prepare_weights()."""
    batch, in_dim = x.shape
    in_pad = weights_t[0].shape[0]

    groups, tile_b, batch_pad, vmem_limit = _plan(weights_t, batch)

    # Cast once; pad ONLY when actually ragged (skips the extra HBM pass in the
    # aligned common case).
    h = x.astype(jnp.bfloat16)
    if batch_pad != batch or in_pad != in_dim:
        h = jnp.pad(h, ((0, batch_pad - batch), (0, in_pad - in_dim)))

    for gi, group_w in enumerate(groups):
        last = gi == len(groups) - 1
        h = _run_group(
            h, group_w, tile_b,
            out_dtype=(out_dtype if last else jnp.bfloat16),
            relu_output=not last,
            vmem_limit=vmem_limit)

    return h[:batch, :out_dim]


# --------------------------------------------------------------------------
# References / demo
# --------------------------------------------------------------------------
def _init_weights(key, input_dim, hidden_layers, output_dim):
    """Deterministic Linear init, PyTorch layout (out_features, in_features)."""
    dims = [input_dim] + list(hidden_layers) + [output_dim]
    weights = []
    for i in range(len(dims) - 1):
        key, sub = jax.random.split(key)
        bound = 1.0 / jnp.sqrt(dims[i])   # matches nn.Linear default uniform bound
        w = jax.random.uniform(sub, (dims[i + 1], dims[i]),
                               minval=-bound, maxval=bound, dtype=jnp.float32)
        weights.append(w)
    return weights


def _reference_forward_f32(x, weights):
    h = x @ weights[0].T
    for w in weights[1:]:
        h = jnp.maximum(h, 0.0)
        h = h @ w.T
    return h


def _reference_forward_bf16(x, weights):
    """Pure-JAX mirror of the kernel numerics (bf16 operands/carry, f32 acc)."""
    h = jnp.dot(x.astype(jnp.bfloat16), weights[0].T.astype(jnp.bfloat16),
                preferred_element_type=jnp.float32)
    for w in weights[1:]:
        h = jnp.maximum(h, 0.0).astype(jnp.bfloat16)
        h = jnp.dot(h, w.T.astype(jnp.bfloat16),
                    preferred_element_type=jnp.float32)
    return h


if __name__ == "__main__":
    key = jax.random.PRNGKey(0)

    batch = 8
    input_dim = 32
    hidden_layers = [64, 32]
    output_dim = 16

    kx, kw = jax.random.split(key)
    x = jax.random.normal(kx, (batch, input_dim), dtype=jnp.float32)
    weights = _init_weights(kw, input_dim, hidden_layers, output_dim)

    # One-time weight prep (transpose + pad + bf16) — not on the per-call path.
    weights_t = prepare_weights(weights)

    out = dnn_forward(x, weights_t, out_dim=output_dim)
    out = jax.block_until_ready(out)
    assert out.shape == (batch, output_dim)
    out_f32 = out.astype(jnp.float32)

    # Tight check vs a pure-JAX mirror of the same bf16/f32-acc numerics
    # (kernel output itself is bf16, hence the ~bf16-ulp tolerance).
    ref_bf16 = _reference_forward_bf16(x, weights)
    assert jnp.allclose(out_f32, ref_bf16, atol=2e-2, rtol=2e-2), \
        "mismatch vs bf16-matched reference"

    # Loose sanity check vs the full-f32 reference (bf16 rounding tolerance).
    ref_f32 = _reference_forward_f32(x, weights)
    assert jnp.allclose(out_f32, ref_f32, atol=1e-1, rtol=1e-1), \
        "mismatch vs f32 reference"

    print("KERNEL_OK")
</pallas_src>

<mosaic_0001>
module attributes {stable_mosaic.version = 11 : i64} {
  func.func @kernel(%arg0: i32, %arg1: memref<16x128xbf16, #tpu.memory_space<vmem>>, %arg2: memref<128x128xbf16, #tpu.memory_space<vmem>>, %arg3: memref<128x128xbf16, #tpu.memory_space<vmem>>, %arg4: memref<128x128xbf16, #tpu.memory_space<vmem>>, %arg5: memref<16x128xbf16, #tpu.memory_space<vmem>>) attributes {dimension_semantics = [#tpu.dimension_semantics<parallel>], iteration_bounds = array<i64: 1>, scalar_prefetch = 0 : i64, scratch_operands = 0 : i64, tpu.core_type = #tpu.core_type<tc>, window_params = [{transform_indices = @transform_0, window_bounds = array<i64: 16, 128>}, {pipeline_mode = #tpu.pipeline_mode<synchronous>, transform_indices = @transform_1, window_bounds = array<i64: 128, 128>}, {pipeline_mode = #tpu.pipeline_mode<synchronous>, transform_indices = @transform_2, window_bounds = array<i64: 128, 128>}, {pipeline_mode = #tpu.pipeline_mode<synchronous>, transform_indices = @transform_3, window_bounds = array<i64: 128, 128>}, {transform_indices = @transform_4, window_bounds = array<i64: 16, 128>}]} {
    %c0 = arith.constant 0 : index
    %c0_0 = arith.constant 0 : index
    %0 = vector.load %arg1[%c0, %c0_0] : memref<16x128xbf16, #tpu.memory_space<vmem>>, vector<16x128xbf16>
    %c0_1 = arith.constant 0 : index
    %c0_2 = arith.constant 0 : index
    %1 = vector.load %arg2[%c0_1, %c0_2] : memref<128x128xbf16, #tpu.memory_space<vmem>>, vector<128x128xbf16>
    %cst = arith.constant dense<0.000000e+00> : vector<16x128xf32>
    %2 = tpu.matmul %0, %1, %cst {dimension_numbers = #tpu.dot_dimension_numbers<[1], [0], [0], [1], [0, 0, 1, 1], [], []>} : vector<16x128xbf16>, vector<128x128xbf16>, vector<16x128xf32> -> vector<16x128xf32>
    %cst_3 = arith.constant 0.000000e+00 : f32
    %3 = vector.broadcast %cst_3 : f32 to vector<16x128xf32>
    %4 = arith.maximumf %2, %3 : vector<16x128xf32>
    %5 = arith.truncf %4 : vector<16x128xf32> to vector<16x128xbf16>
    %c0_4 = arith.constant 0 : index
    %c0_5 = arith.constant 0 : index
    %6 = vector.load %arg3[%c0_4, %c0_5] : memref<128x128xbf16, #tpu.memory_space<vmem>>, vector<128x128xbf16>
    %cst_6 = arith.constant dense<0.000000e+00> : vector<16x128xf32>
    %7 = tpu.matmul %5, %6, %cst_6 {dimension_numbers = #tpu.dot_dimension_numbers<[1], [0], [0], [1], [0, 0, 1, 1], [], []>} : vector<16x128xbf16>, vector<128x128xbf16>, vector<16x128xf32> -> vector<16x128xf32>
    %cst_7 = arith.constant 0.000000e+00 : f32
    %8 = vector.broadcast %cst_7 : f32 to vector<16x128xf32>
    %9 = arith.maximumf %7, %8 : vector<16x128xf32>
    %10 = arith.truncf %9 : vector<16x128xf32> to vector<16x128xbf16>
    %c0_8 = arith.constant 0 : index
    %c0_9 = arith.constant 0 : index
    %11 = vector.load %arg4[%c0_8, %c0_9] : memref<128x128xbf16, #tpu.memory_space<vmem>>, vector<128x128xbf16>
    %cst_10 = arith.constant dense<0.000000e+00> : vector<16x128xf32>
    %12 = tpu.matmul %10, %11, %cst_10 {dimension_numbers = #tpu.dot_dimension_numbers<[1], [0], [0], [1], [0, 0, 1, 1], [], []>} : vector<16x128xbf16>, vector<128x128xbf16>, vector<16x128xf32> -> vector<16x128xf32>
    %13 = arith.truncf %12 : vector<16x128xf32> to vector<16x128xbf16>
    %c0_11 = arith.constant 0 : index
    %c0_12 = arith.constant 0 : index
    %14 = vector.load %arg5[%c0_11, %c0_12] : memref<16x128xbf16, #tpu.memory_space<vmem>>, vector<16x128xbf16>
    tpu.vector_store %arg5[%c0_11, %c0_12], %13 {strides = array<i32>} : memref<16x128xbf16, #tpu.memory_space<vmem>>, vector<16x128xbf16>,
    return
  }
  func.func @transform_0(%arg0: i32) -> (i32, i32) {
    %c0_i32 = arith.constant 0 : i32
    %c0_i32_0 = arith.constant 0 : i32
    return %arg0, %c0_i32 : i32, i32
  }
  func.func @transform_1(%arg0: i32) -> (i32, i32) {
    %c0_i32 = arith.constant 0 : i32
    %c0_i32_0 = arith.constant 0 : i32
    %c0_i32_1 = arith.constant 0 : i32
    return %c0_i32, %c0_i32_0 : i32, i32
  }
  func.func @transform_2(%arg0: i32) -> (i32, i32) {
    %c0_i32 = arith.constant 0 : i32
    %c0_i32_0 = arith.constant 0 : i32
    %c0_i32_1 = arith.constant 0 : i32
    return %c0_i32, %c0_i32_0 : i32, i32
  }
  func.func @transform_3(%arg0: i32) -> (i32, i32) {
    %c0_i32 = arith.constant 0 : i32
    %c0_i32_0 = arith.constant 0 : i32
    %c0_i32_1 = arith.constant 0 : i32
    return %c0_i32, %c0_i32_0 : i32, i32
  }
  func.func @transform_4(%arg0: i32) -> (i32, i32) {
    %c0_i32 = arith.constant 0 : i32
    %c0_i32_0 = arith.constant 0 : i32
    return %arg0, %c0_i32 : i32, i32
  }
}

</mosaic_0001>

<bundles_post_ra>
// kernel: dnn_forward.1
= control target key start
LH: loop header
LB: loop body
LE: loop exit
PB: predicated region body
PF: predicated region fallthrough
CT: control target
= control target key end

     0   :  { %9 = vsyncpa [#allocation3], 0  ;;  %s747_s0 = inlined_call_operand.vmem [shape: bf16[16,128], index: 0, kind: input, shape index: {}]   ;;  %s748_s1 = inlined_call_operand.hbm [shape: bf16[128,128], index: 1, kind: input, shape index: {}]   ;;  %s749_s2 = inlined_call_operand.hbm [shape: bf16[128,128], index: 2, kind: input, shape index: {}]   ;;  %s750_s3 = inlined_call_operand.hbm [shape: bf16[128,128], index: 3, kind: input, shape index: {}]   ;;  %s751_s4 = inlined_call_operand.vmem [shape: bf16[16,128], index: 4, kind: output, shape index: {}]  }
   0x1   :  { %10 = vsyncpa [#allocation5], 0  ;;  %s627_s15 = smov [#allocation4]   ;;  %s628_s17 = smov [#allocation2]  }
   0x2   :  { %s30_s16 = sshll.u32 %s627_s15, 4  ;;  %s18_s18 = sshll.u32 %s628_s17, 4  ;;  %s31_s16 = int_to_ptr.vmem [resolvable:$true] %s30_s16  ;;  %s659_s18 = int_to_ptr.vmem [resolvable:$true] %s18_s18 }
   0x3   :  { %s557_s21 = scalar_lea.hbm %s749_s2, 1024 }
   0x4   :  { %p558_p0 = scmp.ne.s32.totalorder %s749_s2, %s557_s21  ;;  %p561_p1 = scmp.lt.u32.totalorder %s557_s21, %s749_s2 }
   0x6   :  { %p563_p2 = pnand %p561_p1, %p558_p0 }
   0x8   :  { %566 = shalt.err (!%p563_p2)
}
   0x9   :  { %s567_s26 = scalar_lea.vmem %s31_s16, 1024  ;;  %p572_p4 = scmp.lt.s32.totalorder %s31_s16, %s31_s16 }
   0xa   :  { %p568_p3 = scmp.ne.s32.totalorder %s31_s16, %s567_s26  ;;  %p573_p5 = scmp.lt.s32.totalorder %s567_s26, %s567_s26 }
   0xc   :  { %p574_p6 = por %p573_p5, %p572_p4 }
   0xe   :  { %p575_p7 = pnand %p574_p6, %p568_p3 }
  0x10   :  { %578 = shalt.err (!%p575_p7)
}
  0x11   :  { %s629_s27 = smov 64   ;;  %s630_s28 = smov 4  }
  0x12   :  { %36 = dma.hbm_to_vmem [thread:$0]  %s749_s2, 1024, %s31_s16, [#allocation5], %s629_s27, %s629_s27, %s630_s28  }
  0x13   :  { %s579_s7 = scalar_lea.hbm %s748_s1, 1024 }
  0x14   :  { %p580_p8 = scmp.ne.s32.totalorder %s748_s1, %s579_s7  ;;  %p583_p9 = scmp.lt.u32.totalorder %s579_s7, %s748_s1 }
  0x16   :  { %p585_p10 = pnand %p583_p9, %p580_p8 }
  0x18   :  { %588 = shalt.err (!%p585_p10)
}
  0x19   :  { %s589_s12 = scalar_lea.vmem %s659_s18, 1024  ;;  %p594_p12 = scmp.lt.s32.totalorder %s659_s18, %s659_s18 }
  0x1a   :  { %p590_p11 = scmp.ne.s32.totalorder %s659_s18, %s589_s12  ;;  %p595_p13 = scmp.lt.s32.totalorder %s589_s12, %s589_s12 }
  0x1c   :  { %p596_p0 = por %p595_p13, %p594_p12 }
  0x1e   :  { %p597_p1 = pnand %p596_p0, %p590_p11 }
  0x20   :  { %600 = shalt.err (!%p597_p1)
}
  0x21   :  { %24 = dma.hbm_to_vmem [thread:$0]  %s748_s1, 1024, %s659_s18, [#allocation3], %s629_s27, %s629_s27, %s630_s28  }
  0x22   :  { %s631_s14 = smov [#allocation6]   ;;  %s601_s19 = scalar_lea.hbm %s750_s3, 1024 }
  0x23   :  { %s42_s15 = sshll.u32 %s631_s14, 4  ;;  %p602_p2 = scmp.ne.s32.totalorder %s750_s3, %s601_s19  ;;  %s43_s15 = int_to_ptr.vmem [resolvable:$true] %s42_s15 }
  0x24   :  { %p605_p3 = scmp.lt.u32.totalorder %s601_s19, %s750_s3 }
  0x26   :  { %p607_p4 = pnand %p605_p3, %p602_p2 }
  0x28   :  { %610 = shalt.err (!%p607_p4)
}
  0x29   :  { %s611_s24 = scalar_lea.vmem %s43_s15, 1024  ;;  %p616_p6 = scmp.lt.s32.totalorder %s43_s15, %s43_s15 }
  0x2a   :  { %p612_p5 = scmp.ne.s32.totalorder %s43_s15, %s611_s24  ;;  %p617_p7 = scmp.lt.s32.totalorder %s611_s24, %s611_s24 }
  0x2c   :  { %p618_p8 = por %p617_p7, %p616_p6 }
  0x2e   :  { %p619_p9 = pnand %p618_p8, %p612_p5 }
  0x30   :  { %622 = shalt.err (!%p619_p9)
}
  0x31   :  { %48 = dma.hbm_to_vmem [thread:$0]  %s750_s3, 1024, %s43_s15, [#allocation5], %s629_s27, %s629_s27, %s630_s28  }
  0x32   :  { %623 = dma.done.wait [#allocation3], 1024  }
  0x33   :  { %624 = vsyncadd [#allocation3], 4294966272 }
  0x34   :  { %625 = dma.done.wait [#allocation5], 2048  }
  0x35   :  { %626 = vsyncadd [#allocation5], 4294965248  ;;  %v632_v0 = vmov 0.0   ;;  %vm633_vm0 = vmmov 0   ;;  %v532_v1 = vld [vmem:[#allocation2] sm:$0xff]   ;;  %v533_v2 = vld [vmem:[#allocation2 + $0x8] sm:$0xff]  }
  0x36   :  { %465 = vmatprep.subr.bf16.mxu0 %v632_v0  ;;  %481 = vmatprep.mubr.msk.bf16.mxu0 %vm633_vm0, %v632_v0  ;;  %v534_v3 = vld [vmem:[#allocation2 + $0x10] sm:$0xff]   ;;  %v541_v4 = vld [vmem:[#allocation4] sm:$0xff]   ;;  %v535_v5 = vld [vmem:[#allocation2 + $0x18] sm:$0xff]  }
  0x37   :  { %485 = vmatprep.subr.bf16.mxu1 %v632_v0  ;;  %501 = vmatprep.mubr.msk.bf16.mxu1 %vm633_vm0, %v632_v0  ;;  %v542_v6 = vld [vmem:[#allocation4 + $0x8] sm:$0xff]   ;;  %v536_v7 = vld [vmem:[#allocation2 + $0x20] sm:$0xff]   ;;  %v543_v8 = vld [vmem:[#allocation4 + $0x10] sm:$0xff]  }
  0x38   :  { %466 = vmatpush3.bf16.msra.mxu0 %v532_v1  ;;  %486 = vmatpush3.bf16.msra.mxu1 %v541_v4  ;;  %v537_v9 = vld [vmem:[#allocation2 + $0x28] sm:$0xff]   ;;  %v544_v10 = vld [vmem:[#allocation4 + $0x18] sm:$0xff]   ;;  %v538_v11 = vld [vmem:[#allocation2 + $0x30] sm:$0xff]  }
  0x39   :  { %467 = vmatprep.subr.bf16.mxu0 %v632_v0  ;;  %487 = vmatprep.subr.bf16.mxu1 %v632_v0  ;;  %v545_v12 = vld [vmem:[#allocation4 + $0x20] sm:$0xff]   ;;  %v539_v13 = vld [vmem:[#allocation2 + $0x38] sm:$0xff]   ;;  %v546_v14 = vld [vmem:[#allocation4 + $0x28] sm:$0xff]  }
  0x3a   :  { %v540_v15 = vld [vmem:[%s747_s0] sm:$0xff]   ;;  %v547_v16 = vld [vmem:[#allocation4 + $0x30] sm:$0xff]   ;;  %v548_v17 = vld [vmem:[#allocation4 + $0x38] sm:$0xff]  }
  0x3b   :  { %v549_v18 = vld [vmem:[#allocation6] sm:$0xff]   ;;  %v550_v19 = vld [vmem:[#allocation6 + $0x8] sm:$0xff]   ;;  %v551_v20 = vld [vmem:[#allocation6 + $0x10] sm:$0xff]  }
  0x3c   :  { %468 = vmatpush3.bf16.msra.mxu0 %v533_v2  ;;  %488 = vmatpush3.bf16.msra.mxu1 %v542_v6  ;;  %v552_v21 = vld [vmem:[#allocation6 + $0x18] sm:$0xff]   ;;  %v553_v22 = vld [vmem:[#allocation6 + $0x20] sm:$0xff]   ;;  %v554_v23 = vld [vmem:[#allocation6 + $0x28] sm:$0xff]  }
  0x3d   :  { %469 = vmatprep.subr.bf16.mxu0 %v632_v0  ;;  %489 = vmatprep.subr.bf16.mxu1 %v632_v0  ;;  %v555_v31 = vld [vmem:[#allocation6 + $0x30] sm:$0xff]   ;;  %v556_v32 = vld [vmem:[#allocation6 + $0x38] sm:$0xff]  }
  0x40   :  { %470 = vmatpush3.bf16.msra.mxu0 %v534_v3  ;;  %490 = vmatpush3.bf16.msra.mxu1 %v543_v8 }
  0x41   :  { %471 = vmatprep.subr.bf16.mxu0 %v632_v0  ;;  %491 = vmatprep.subr.bf16.mxu1 %v632_v0 }
  0x44   :  { %472 = vmatpush3.bf16.msra.mxu0 %v535_v5  ;;  %492 = vmatpush3.bf16.msra.mxu1 %v544_v10 }
  0x45   :  { %473 = vmatprep.subr.bf16.mxu0 %v632_v0  ;;  %493 = vmatprep.subr.bf16.mxu1 %v632_v0 }
  0x48   :  { %474 = vmatpush3.bf16.msra.mxu0 %v536_v7  ;;  %494 = vmatpush3.bf16.msra.mxu1 %v545_v12 }
  0x49   :  { %475 = vmatprep.subr.bf16.mxu0 %v632_v0  ;;  %495 = vmatprep.subr.bf16.mxu1 %v632_v0 }
  0x4c   :  { %476 = vmatpush3.bf16.msra.mxu0 %v537_v9  ;;  %496 = vmatpush3.bf16.msra.mxu1 %v546_v14 }
  0x4d   :  { %477 = vmatprep.subr.bf16.mxu0 %v632_v0  ;;  %497 = vmatprep.subr.bf16.mxu1 %v632_v0 }
  0x50   :  { %478 = vmatpush3.bf16.msra.mxu0 %v538_v11  ;;  %498 = vmatpush3.bf16.msra.mxu1 %v547_v16 }
  0x51   :  { %479 = vmatprep.subr.bf16.mxu0 %v632_v0  ;;  %499 = vmatprep.subr.bf16.mxu1 %v632_v0 }
  0x54   :  { %480 = vmatpush3.bf16.msra.mxu0 %v539_v13  ;;  %500 = vmatpush3.bf16.msra.mxu1 %v548_v17 }
  0x55   :  { %505 = vmatprep.subr.bf16.mxu0 %v632_v0 }
  0x57   :  { %482 = vmatmul.mubr.bf16.vlgmr.msra.gmra.mrb[0].mxu0 %v540_v15 }
  0x58   :  { %521 = vmatprep.mubr.msk.bf16.mxu0 %vm633_vm0, %v632_v0  ;;  %506 = vmatpush3.bf16.msra.mxu0 %v549_v18 }
  0x59   :  { %507 = vmatprep.subr.bf16.mxu0 %v632_v0 }
  0x5c   :  { %508 = vmatpush3.bf16.msra.mxu0 %v550_v19 }
  0x5d   :  { %509 = vmatprep.subr.bf16.mxu0 %v632_v0 }
  0x60   :  { %510 = vmatpush3.bf16.msra.mxu0 %v551_v20 }
  0x61   :  { %511 = vmatprep.subr.bf16.mxu0 %v632_v0 }
  0x64   :  { %512 = vmatpush3.bf16.msra.mxu0 %v552_v21 }
  0x65   :  { %513 = vmatprep.subr.bf16.mxu0 %v632_v0 }
  0x68   :  { %514 = vmatpush3.bf16.msra.mxu0 %v553_v22 }
  0x69   :  { %515 = vmatprep.subr.bf16.mxu0 %v632_v0 }
  0x6c   :  { %516 = vmatpush3.bf16.msra.mxu0 %v554_v23 }
  0x6d   :  { %517 = vmatprep.subr.bf16.mxu0 %v632_v0 }
  0x70   :  { %518 = vmatpush3.bf16.msra.mxu0 %v555_v31 }
  0x71   :  { %519 = vmatprep.subr.bf16.mxu0 %v632_v0 }
  0x74   :  { %520 = vmatpush3.bf16.msra.mxu0 %v556_v32 }
 0x12a   :  { %v165_v24 = vpop.f32.mrb[0].mxu0 }
 0x12b   :  { %v483_v25 = vpop.f32.mrb[1].mxu0  ;;  %v172_v27 = vmax.f32 %v165_v24, 0.0 }
 0x12c   :  { %v168_v26 = vpop.f32.mrb[2].mxu0 }
 0x12d   :  { %v173_v28 = vmax.f32 %v168_v26, 0.0  ;;  %v484_v29 = vpop.f32.mrb[3].mxu0 }
 0x12f   :  { %v174_v30 = vpack.c.bf16 %v173_v28, %v172_v27 }
 0x131   :  { %502 = vmatmul.mubr.bf16.vlgmr.msra.gmra.mrb[0].mxu1 %v174_v30 }
 0x204   :  { %v273_v33 = vpop.f32.mrb[0].mxu1 }
 0x205   :  { %v503_v34 = vpop.f32.mrb[1].mxu1  ;;  %v280_v36 = vmax.f32 %v273_v33, 0.0 }
 0x206   :  { %v276_v35 = vpop.f32.mrb[2].mxu1 }
 0x207   :  { %v281_v37 = vmax.f32 %v276_v35, 0.0  ;;  %v504_v38 = vpop.f32.mrb[3].mxu1 }
 0x209   :  { %v282_v39 = vpack.c.bf16 %v281_v37, %v280_v36 }
 0x20b   :  { %522 = vmatmul.mubr.bf16.vlgmr.msra.gmra.mrb[4].mxu0 %v282_v39 }
 0x2de   :  { %v381_v40 = vpop.f32.mrb[4].mxu0 }
 0x2df   :  { %v523_v41 = vpop.f32.mrb[5].mxu0 }
 0x2e0   :  { %v384_v42 = vpop.f32.mrb[6].mxu0 }
 0x2e1   :  { %v436_v43 = vpack.c.bf16 %v384_v42, %v381_v40  ;;  %v524_v44 = vpop.f32.mrb[7].mxu0 }
 0x2e3   :  { %437 = vst [vmem:[%s751_s4] sm:$0xff] %v436_v43  }
 0x2e4   :  { %402 = vsyncpa [#allocation3], 1 }
 0x2e5   :  { %403 = vsyncpa [#allocation5], 1 }

</bundles_post_ra>
